<compile_context>
chip_gen: v7x
topology: tpu7x:2x2x1
jax: 0.10.0
libtpu: 0.0.40
codegen_flags: <defaults>
</compile_context>

<pallas_src>
import functools

import jax
import jax.numpy as jnp
from jax import lax
from jax.experimental import pallas as pl
from jax.experimental.pallas import tpu as pltpu


def _round_up(x, m):
    return (x + m - 1) // m * m


# Mode-batched matmul: out[m, b, o] = sum_i lhs[m, b, i] * rhs[m, i, o]
_DN = (((2,), (1,)), ((0,), (0,)))


def _spectral_mul_kernel(xr_ref, xi_ref, wr_ref, wi_ref, or_ref, oi_ref):
    """One (slab, mode-block) step of the complex channel contraction.

    In-kernel shapes (leading slab axis squeezed by the BlockSpec):
      xr/xi : (TM, B,   Cin)   real / imag retained Fourier modes
      wr/wi : (TM, Cin, Cout)  real / imag spectral weights (Cout NOT padded)
      or/oi : (TM, B,   Cout)  real / imag outputs, f32
    """
    xr = xr_ref[...]
    xi = xi_ref[...]
    wr = wr_ref[...]
    wi = wi_ref[...]

    dot = functools.partial(lax.dot_general, dimension_numbers=_DN,
                            preferred_element_type=jnp.float32)

    # Plain 4-matmul complex product (review: Karatsuba pre-adds create
    # weight-sized temporaries + VALU work on a memory-bound kernel while the
    # MXU is nowhere near saturated).
    or_ref[...] = dot(xr, wr) - dot(xi, wi)
    oi_ref[...] = dot(xr, wi) + dot(xi, wr)


def _vmem_params():
    """Generation-aware (per-kernel VMEM budget, vmem_limit_bytes)."""
    vmem_cap = None
    try:
        vmem_cap = getattr(pltpu.get_tpu_info(), "vmem_capacity_bytes", None)
    except Exception:
        vmem_cap = None
    if vmem_cap is None or int(vmem_cap) <= 64 * 2 ** 20:
        # v7x (64 MiB physical VMEM) — or unknown: stay conservative.
        return 10 * 2 ** 20, 44 * 2 ** 20
    # v5e / v6e: 128 MiB physical VMEM (scoped defaults are only 16 / 32 MiB).
    return 24 * 2 ** 20, 100 * 2 ** 20


def _choose_mode_block(batch, cin, cout, n_modes, x_itemsize, w_itemsize,
                       max_modes_per_block=None):
    """Pick the per-step mode-block size TM and padded mode count MP.

    VMEM accounting uses Mosaic's (8, 128) tile padding of the last two block
    dims and leaves room for double buffering plus in-kernel f32 temporaries.
    """
    budget, vmem_limit = _vmem_params()

    bp = _round_up(batch, 8)
    cin_sub = _round_up(cin, 8)
    cin_lane = _round_up(cin, 128)
    cout_lane = _round_up(cout, 128)

    bytes_per_mode = (
        2 * 2 * bp * cin_lane * x_itemsize          # xr, xi tiles, double-buffered
        + 2 * 2 * cin_sub * cout_lane * w_itemsize  # wr, wi tiles, double-buffered
        + 2 * 2 * bp * cout_lane * 4                # or, oi tiles (f32), double-buffered
        + 6 * bp * cout_lane * 4                    # in-kernel dot temporaries
        + 2 * cin_sub * cout_lane * 4               # operand-copy headroom
    )
    tm = max(1, min(n_modes, budget // max(1, bytes_per_mode)))
    if max_modes_per_block is not None:
        tm = max(1, min(tm, int(max_modes_per_block)))
    # Balance blocks so MP - n_modes (wasted weight traffic) is minimal.
    n_blk = -(-n_modes // tm)
    tm = -(-n_modes // n_blk)
    mp = tm * n_blk
    return tm, mp, vmem_limit


def _layout_weights(w1, w2, mp, stream_dtype):
    """(Cin, Cout, M1, M2) complex x2  ->  real/imag (2, MP, Cin, Cout) planes.

    Done ONCE (at module init) — the per-forward weight relayout previously
    doubled the dominant HBM stream.
    """
    cin, cout, m1, m2 = w1.shape
    m = m1 * m2
    w = jnp.stack([w1, w2]).reshape(2, cin, cout, m)
    w = jnp.transpose(w, (0, 3, 1, 2))                       # (2, M, Cin, Cout)
    w = jnp.pad(w, ((0, 0), (0, mp - m), (0, 0), (0, 0)))
    wr = jnp.real(w).astype(stream_dtype)
    wi = jnp.imag(w).astype(stream_dtype)
    return wr, wi


def spectral_mul_prelayout(x_top, x_bot, wr, wi, *, tm, vmem_limit, stream_dtype):
    """Complex einsum('bixy,ioxy->boxy') for both slabs, with pre-laid-out weights.

    x_top / x_bot : (B, Cin, M1, M2) complex
    wr / wi       : (2, MP, Cin, Cout) real / imag weight planes (stream dtype)
    returns (out_top, out_bot), each (B, Cout, M1, M2) complex64.
    """
    B, CIN, M1, M2 = x_top.shape
    _, MP, CIN_w, COUT = wr.shape
    assert CIN == CIN_w and x_bot.shape == x_top.shape and wi.shape == wr.shape
    M = M1 * M2
    assert MP % tm == 0 and MP >= M
    n_mblk = MP // tm

    # Activation re-layout (the small stream): (B,Cin,M1,M2) x2 -> (2, MP, B, Cin).
    # TODO(synk): this transpose/pad is one extra XLA pass over the (small)
    # activation stream; an in-kernel XLU transpose could remove it.
    x = jnp.stack([x_top, x_bot]).reshape(2, B, CIN, M)
    x = jnp.transpose(x, (0, 3, 1, 2))
    x = jnp.pad(x, ((0, 0), (0, MP - M), (0, 0), (0, 0)))
    xr = jnp.real(x).astype(stream_dtype)
    xi = jnp.imag(x).astype(stream_dtype)

    x_spec = pl.BlockSpec((None, tm, B, CIN), lambda s, m: (s, m, 0, 0))
    w_spec = pl.BlockSpec((None, tm, CIN, COUT), lambda s, m: (s, m, 0, 0))
    o_spec = pl.BlockSpec((None, tm, B, COUT), lambda s, m: (s, m, 0, 0))

    itemsize = jnp.dtype(stream_dtype).itemsize
    flops = 2 * MP * 8 * B * CIN * COUT                  # 2 slabs x 4 real matmuls
    bytes_accessed = (2 * 2 * MP * B * CIN * itemsize
                      + 2 * 2 * MP * CIN * COUT * itemsize
                      + 2 * 2 * MP * B * COUT * 4)

    out_r, out_i = pl.pallas_call(
        _spectral_mul_kernel,
        grid=(2, n_mblk),
        in_specs=[x_spec, x_spec, w_spec, w_spec],
        out_specs=[o_spec, o_spec],
        out_shape=[
            jax.ShapeDtypeStruct((2, MP, B, COUT), jnp.float32),
            jax.ShapeDtypeStruct((2, MP, B, COUT), jnp.float32),
        ],
        compiler_params=pltpu.CompilerParams(
            dimension_semantics=("parallel", "parallel"),
            vmem_limit_bytes=int(vmem_limit)),
        cost_estimate=pl.CostEstimate(flops=int(flops), transcendentals=0,
                                      bytes_accessed=int(bytes_accessed)),
    )(xr, xi, wr, wi)

    out = lax.complex(out_r, out_i)[:, :M]                      # (2, M, B, Cout)
    out = jnp.transpose(out, (0, 2, 3, 1)).reshape(2, B, COUT, M1, M2)
    return out[0], out[1]


def spectral_mul_pallas(x_top, x_bot, w1, w2, *, stream_dtype=jnp.float32,
                        max_modes_per_block=None):
    """Convenience wrapper: lays out the weights and runs the Pallas contraction."""
    B, CIN, M1, M2 = x_top.shape
    CIN_w, COUT, M1w, M2w = w1.shape
    assert (CIN, M1, M2) == (CIN_w, M1w, M2w)
    assert x_bot.shape == x_top.shape and w2.shape == w1.shape
    M = M1 * M2
    itemsize = jnp.dtype(stream_dtype).itemsize
    tm, mp, vmem_limit = _choose_mode_block(
        B, CIN, COUT, M, itemsize, itemsize,
        max_modes_per_block=max_modes_per_block)
    wr, wi = _layout_weights(w1, w2, mp, stream_dtype)
    return spectral_mul_prelayout(x_top, x_bot, wr, wi, tm=tm,
                                  vmem_limit=vmem_limit, stream_dtype=stream_dtype)


class SpectralConv2d:
    """JAX/Pallas port of the PyTorch SpectralConv2d module (forward only)."""

    def __init__(self, in_channels, out_channels, modes1, modes2, key,
                 stream_dtype=jnp.bfloat16, batch_hint=8):
        self.in_channels = in_channels
        self.out_channels = out_channels
        self.modes1 = modes1
        self.modes2 = modes2
        self.stream_dtype = stream_dtype
        scale = 1.0 / (in_channels * out_channels)
        k1, k2, k3, k4 = jax.random.split(key, 4)
        shape = (in_channels, out_channels, modes1, modes2)
        # torch.rand(..., dtype=cfloat): uniform [0,1) real and imag parts.
        self.weights1 = scale * (jax.random.uniform(k1, shape, jnp.float32)
                                 + 1j * jax.random.uniform(k2, shape, jnp.float32))
        self.weights2 = scale * (jax.random.uniform(k3, shape, jnp.float32)
                                 + 1j * jax.random.uniform(k4, shape, jnp.float32))

        # Hoisted, cached kernel-ready weight layout (review item): the
        # stack/transpose/real-imag split/cast/mode-pad happens ONCE here.
        itemsize = jnp.dtype(stream_dtype).itemsize
        self._tm, self._mp, self._vmem_limit = _choose_mode_block(
            batch_hint, in_channels, out_channels, modes1 * modes2,
            itemsize, itemsize)
        self._wr, self._wi = _layout_weights(
            self.weights1, self.weights2, self._mp, stream_dtype)

    def __call__(self, x):
        # x: (B, Cin, H, W) float32
        B, _, H, W = x.shape
        m1, m2 = self.modes1, self.modes2

        # TODO(synk): rfft2 / irfft2 have no Pallas TPU primitive; they stay in XLA.
        x_ft = jnp.fft.rfft2(x)                    # (B, Cin, H, W//2+1) complex64

        out_top, out_bot = spectral_mul_prelayout(
            x_ft[:, :, :m1, :m2], x_ft[:, :, -m1:, :m2],
            self._wr, self._wi, tm=self._tm, vmem_limit=self._vmem_limit,
            stream_dtype=self.stream_dtype)

        out_ft = jnp.zeros((B, self.out_channels, H, W // 2 + 1), jnp.complex64)
        out_ft = out_ft.at[:, :, :m1, :m2].set(out_top)
        out_ft = out_ft.at[:, :, -m1:, :m2].set(out_bot)
        return jnp.fft.irfft2(out_ft, s=(H, W))


def _rel_err(got, want):
    return float(jnp.max(jnp.abs(got - want)) / (jnp.max(jnp.abs(want)) + 1e-12))


if __name__ == "__main__":
    key = jax.random.PRNGKey(0)
    keys = jax.random.split(key, 10)

    # --- test 1: module forward (default bf16 streaming, f32 accumulation) ---
    B, CIN, COUT, H, W = 2, 4, 4, 16, 16
    MODES1, MODES2 = 4, 4
    x = jax.random.normal(keys[0], (B, CIN, H, W), dtype=jnp.float32)
    layer = SpectralConv2d(CIN, COUT, MODES1, MODES2, keys[1])

    fwd = jax.jit(lambda v: layer(v))
    y = jax.block_until_ready(fwd(x))
    assert y.shape == (B, COUT, H, W)

    x_ft = jnp.fft.rfft2(x)
    ref_ft = jnp.zeros((B, COUT, H, W // 2 + 1), jnp.complex64)
    ref_ft = ref_ft.at[:, :, :MODES1, :MODES2].set(
        jnp.einsum('bixy,ioxy->boxy', x_ft[:, :, :MODES1, :MODES2], layer.weights1))
    ref_ft = ref_ft.at[:, :, -MODES1:, :MODES2].set(
        jnp.einsum('bixy,ioxy->boxy', x_ft[:, :, -MODES1:, :MODES2], layer.weights2))
    y_ref = jnp.fft.irfft2(ref_ft, s=(H, W))
    err = _rel_err(y, y_ref)
    assert err < 5e-2, f"module (bf16 stream) rel err {err}"

    # --- test 2: kernel-level exact layout check (f32 stream, integer-valued
    #             data so the result is exact regardless of MXU pass count,
    #             forced multi-block grid) ------------------------------------
    B2, CI2, CO2, M1b, M2b = 2, 8, 8, 8, 8
    cshape = (B2, CI2, M1b, M2b)
    wshape = (CI2, CO2, M1b, M2b)

    def _int_complex(kr, ki, shape):
        r = jax.random.randint(kr, shape, -3, 4).astype(jnp.float32)
        i = jax.random.randint(ki, shape, -3, 4).astype(jnp.float32)
        return (r + 1j * i).astype(jnp.complex64)

    xt = _int_complex(keys[2], keys[3], cshape)
    xb = _int_complex(keys[4], keys[5], cshape)
    w1b = _int_complex(keys[6], keys[7], wshape)
    w2b = _int_complex(keys[8], keys[9], wshape)

    o_top, o_bot = jax.block_until_ready(spectral_mul_pallas(
        xt, xb, w1b, w2b, stream_dtype=jnp.float32, max_modes_per_block=16))
    r_top = jnp.einsum('bixy,ioxy->boxy', xt, w1b)
    r_bot = jnp.einsum('bixy,ioxy->boxy', xb, w2b)
    assert _rel_err(o_top, r_top) < 1e-6, f"top rel err {_rel_err(o_top, r_top)}"
    assert _rel_err(o_bot, r_bot) < 1e-6, f"bot rel err {_rel_err(o_bot, r_bot)}"

    # --- test 3: kernel-level bf16 streaming accuracy -------------------------
    xt3 = (jax.random.normal(keys[2], cshape)
           + 1j * jax.random.normal(keys[3], cshape)).astype(jnp.complex64)
    xb3 = (jax.random.normal(keys[4], cshape)
           + 1j * jax.random.normal(keys[5], cshape)).astype(jnp.complex64)
    w13 = (jax.random.normal(keys[6], wshape)
           + 1j * jax.random.normal(keys[7], wshape)).astype(jnp.complex64)
    w23 = (0.5 * jax.random.normal(keys[8], wshape)
           + 2.0j * jax.random.normal(keys[9], wshape)).astype(jnp.complex64)
    o_top3, o_bot3 = jax.block_until_ready(spectral_mul_pallas(
        xt3, xb3, w13, w23, stream_dtype=jnp.bfloat16, max_modes_per_block=32))
    r_top3 = jnp.einsum('bixy,ioxy->boxy', xt3, w13)
    r_bot3 = jnp.einsum('bixy,ioxy->boxy', xb3, w23)
    assert _rel_err(o_top3, r_top3) < 5e-2, f"bf16 top rel err {_rel_err(o_top3, r_top3)}"
    assert _rel_err(o_bot3, r_bot3) < 5e-2, f"bf16 bot rel err {_rel_err(o_bot3, r_bot3)}"

    print("KERNEL_OK")
</pallas_src>

<mosaic_0001>
module attributes {stable_mosaic.version = 11 : i64} {
  func.func @_spectral_mul_kernel(%arg0: i32, %arg1: i32, %arg2: memref<1x16x2x4xbf16, #tpu.memory_space<vmem>>, %arg3: memref<1x16x2x4xbf16, #tpu.memory_space<vmem>>, %arg4: memref<1x16x4x4xbf16, #tpu.memory_space<vmem>>, %arg5: memref<1x16x4x4xbf16, #tpu.memory_space<vmem>>, %arg6: memref<1x16x2x4xf32, #tpu.memory_space<vmem>>, %arg7: memref<1x16x2x4xf32, #tpu.memory_space<vmem>>) attributes {dimension_semantics = [#tpu.dimension_semantics<parallel>, #tpu.dimension_semantics<parallel>], iteration_bounds = array<i64: 2, 1>, scalar_prefetch = 0 : i64, scratch_operands = 0 : i64, tpu.core_type = #tpu.core_type<tc>, window_params = [{transform_indices = @transform_0, window_bounds = array<i64: 1, 16, 2, 4>}, {transform_indices = @transform_1, window_bounds = array<i64: 1, 16, 2, 4>}, {transform_indices = @transform_2, window_bounds = array<i64: 1, 16, 4, 4>}, {transform_indices = @transform_3, window_bounds = array<i64: 1, 16, 4, 4>}, {transform_indices = @transform_4, window_bounds = array<i64: 1, 16, 2, 4>}, {transform_indices = @transform_5, window_bounds = array<i64: 1, 16, 2, 4>}]} {
    %c0 = arith.constant 0 : index
    %c0_0 = arith.constant 0 : index
    %c0_1 = arith.constant 0 : index
    %c0_2 = arith.constant 0 : index
    %0 = vector.load %arg2[%c0, %c0_0, %c0_1, %c0_2] : memref<1x16x2x4xbf16, #tpu.memory_space<vmem>>, vector<1x16x2x4xbf16>
    %1 = vector.shape_cast %0 : vector<1x16x2x4xbf16> to vector<16x2x4xbf16>
    %c0_3 = arith.constant 0 : index
    %c0_4 = arith.constant 0 : index
    %c0_5 = arith.constant 0 : index
    %c0_6 = arith.constant 0 : index
    %2 = vector.load %arg3[%c0_3, %c0_4, %c0_5, %c0_6] : memref<1x16x2x4xbf16, #tpu.memory_space<vmem>>, vector<1x16x2x4xbf16>
    %3 = vector.shape_cast %2 : vector<1x16x2x4xbf16> to vector<16x2x4xbf16>
    %c0_7 = arith.constant 0 : index
    %c0_8 = arith.constant 0 : index
    %c0_9 = arith.constant 0 : index
    %c0_10 = arith.constant 0 : index
    %4 = vector.load %arg4[%c0_7, %c0_8, %c0_9, %c0_10] : memref<1x16x4x4xbf16, #tpu.memory_space<vmem>>, vector<1x16x4x4xbf16>
    %5 = vector.shape_cast %4 : vector<1x16x4x4xbf16> to vector<16x4x4xbf16>
    %c0_11 = arith.constant 0 : index
    %c0_12 = arith.constant 0 : index
    %c0_13 = arith.constant 0 : index
    %c0_14 = arith.constant 0 : index
    %6 = vector.load %arg5[%c0_11, %c0_12, %c0_13, %c0_14] : memref<1x16x4x4xbf16, #tpu.memory_space<vmem>>, vector<1x16x4x4xbf16>
    %7 = vector.shape_cast %6 : vector<1x16x4x4xbf16> to vector<16x4x4xbf16>
    %cst = arith.constant dense<0.000000e+00> : vector<16x2x4xf32>
    %8 = tpu.matmul %1, %5, %cst {dimension_numbers = #tpu.dot_dimension_numbers<[2], [1], [1], [2], [0, 0, 0, 1, 1, 2], [0], [0]>} : vector<16x2x4xbf16>, vector<16x4x4xbf16>, vector<16x2x4xf32> -> vector<16x2x4xf32>
    %cst_15 = arith.constant dense<0.000000e+00> : vector<16x2x4xf32>
    %9 = tpu.matmul %3, %7, %cst_15 {dimension_numbers = #tpu.dot_dimension_numbers<[2], [1], [1], [2], [0, 0, 0, 1, 1, 2], [0], [0]>} : vector<16x2x4xbf16>, vector<16x4x4xbf16>, vector<16x2x4xf32> -> vector<16x2x4xf32>
    %10 = arith.subf %8, %9 : vector<16x2x4xf32>
    %c0_16 = arith.constant 0 : index
    %c0_17 = arith.constant 0 : index
    %c0_18 = arith.constant 0 : index
    %c0_19 = arith.constant 0 : index
    %11 = vector.load %arg6[%c0_16, %c0_17, %c0_18, %c0_19] : memref<1x16x2x4xf32, #tpu.memory_space<vmem>>, vector<1x16x2x4xf32>
    %12 = vector.shape_cast %11 : vector<1x16x2x4xf32> to vector<16x2x4xf32>
    %13 = vector.shape_cast %10 : vector<16x2x4xf32> to vector<1x16x2x4xf32>
    tpu.vector_store %arg6[%c0_16, %c0_17, %c0_18, %c0_19], %13 {strides = array<i32>} : memref<1x16x2x4xf32, #tpu.memory_space<vmem>>, vector<1x16x2x4xf32>,
    %cst_20 = arith.constant dense<0.000000e+00> : vector<16x2x4xf32>
    %14 = tpu.matmul %1, %7, %cst_20 {dimension_numbers = #tpu.dot_dimension_numbers<[2], [1], [1], [2], [0, 0, 0, 1, 1, 2], [0], [0]>} : vector<16x2x4xbf16>, vector<16x4x4xbf16>, vector<16x2x4xf32> -> vector<16x2x4xf32>
    %cst_21 = arith.constant dense<0.000000e+00> : vector<16x2x4xf32>
    %15 = tpu.matmul %3, %5, %cst_21 {dimension_numbers = #tpu.dot_dimension_numbers<[2], [1], [1], [2], [0, 0, 0, 1, 1, 2], [0], [0]>} : vector<16x2x4xbf16>, vector<16x4x4xbf16>, vector<16x2x4xf32> -> vector<16x2x4xf32>
    %16 = arith.addf %14, %15 : vector<16x2x4xf32>
    %c0_22 = arith.constant 0 : index
    %c0_23 = arith.constant 0 : index
    %c0_24 = arith.constant 0 : index
    %c0_25 = arith.constant 0 : index
    %17 = vector.load %arg7[%c0_22, %c0_23, %c0_24, %c0_25] : memref<1x16x2x4xf32, #tpu.memory_space<vmem>>, vector<1x16x2x4xf32>
    %18 = vector.shape_cast %17 : vector<1x16x2x4xf32> to vector<16x2x4xf32>
    %19 = vector.shape_cast %16 : vector<16x2x4xf32> to vector<1x16x2x4xf32>
    tpu.vector_store %arg7[%c0_22, %c0_23, %c0_24, %c0_25], %19 {strides = array<i32>} : memref<1x16x2x4xf32, #tpu.memory_space<vmem>>, vector<1x16x2x4xf32>,
    return
  }
  func.func @transform_0(%arg0: i32, %arg1: i32) -> (i32, i32, i32, i32) {
    %c0_i32 = arith.constant 0 : i32
    %c0_i32_0 = arith.constant 0 : i32
    %c0_i32_1 = arith.constant 0 : i32
    return %arg0, %arg1, %c0_i32, %c0_i32_0 : i32, i32, i32, i32
  }
  func.func @transform_1(%arg0: i32, %arg1: i32) -> (i32, i32, i32, i32) {
    %c0_i32 = arith.constant 0 : i32
    %c0_i32_0 = arith.constant 0 : i32
    %c0_i32_1 = arith.constant 0 : i32
    return %arg0, %arg1, %c0_i32, %c0_i32_0 : i32, i32, i32, i32
  }
  func.func @transform_2(%arg0: i32, %arg1: i32) -> (i32, i32, i32, i32) {
    %c0_i32 = arith.constant 0 : i32
    %c0_i32_0 = arith.constant 0 : i32
    %c0_i32_1 = arith.constant 0 : i32
    return %arg0, %arg1, %c0_i32, %c0_i32_0 : i32, i32, i32, i32
  }
  func.func @transform_3(%arg0: i32, %arg1: i32) -> (i32, i32, i32, i32) {
    %c0_i32 = arith.constant 0 : i32
    %c0_i32_0 = arith.constant 0 : i32
    %c0_i32_1 = arith.constant 0 : i32
    return %arg0, %arg1, %c0_i32, %c0_i32_0 : i32, i32, i32, i32
  }
  func.func @transform_4(%arg0: i32, %arg1: i32) -> (i32, i32, i32, i32) {
    %c0_i32 = arith.constant 0 : i32
    %c0_i32_0 = arith.constant 0 : i32
    %c0_i32_1 = arith.constant 0 : i32
    return %arg0, %arg1, %c0_i32, %c0_i32_0 : i32, i32, i32, i32
  }
  func.func @transform_5(%arg0: i32, %arg1: i32) -> (i32, i32, i32, i32) {
    %c0_i32 = arith.constant 0 : i32
    %c0_i32_0 = arith.constant 0 : i32
    %c0_i32_1 = arith.constant 0 : i32
    return %arg0, %arg1, %c0_i32, %c0_i32_0 : i32, i32, i32, i32
  }
}

</mosaic_0001>

<bundles_post_ra>
// kernel: reverse.1
= control target key start
LH: loop header
LB: loop body
LE: loop exit
PB: predicated region body
PF: predicated region fallthrough
CT: control target
= control target key end

     0   :  { %v71_v3 = vlaneseq  ;;  %v64_v9 = vld [vmem:[#allocation0 + $0x7] ss:$-1 sm:$0xff]  ;;  %v78_v12 = vld [vmem:[#allocation0 + $0x17] ss:$-1 sm:$0xff]  ;;  %s329_s0 = inlined_call_operand.vmem [shape: f32[2,4,16,7], index: 0, kind: input, shape index: {}]   ;;  %s330_s1 = inlined_call_operand.vmem [shape: f32[2,4,16,7], index: 1, kind: output, shape index: {}]  }
   0x1   :  { %v44_v0 = vld [vmem:[%s329_s0] sm:$0xff]  ;;  %v46_v1 = vld [vmem:[%s329_s0 + $0x8] sm:$0xff]  ;;  %v48_v2 = vld [vmem:[%s329_s0 + $0x10] sm:$0xff]  ;;  %v65_v10 = vrot.slane %v64_v9, 1  ;;  %v79_v14 = vrot.slane %v78_v12, 1 }
   0x2   :  { %45 = vst [vmem:[#allocation0 + $0x8] sm:$0xff] %v44_v0  ;;  %47 = vst [vmem:[#allocation0 + $0x18] sm:$0xff] %v46_v1  ;;  %v50_v4 = vld [vmem:[%s329_s0 + $0x18] sm:$0xff]  ;;  %v52_v5 = vld [vmem:[%s329_s0 + $0x20] sm:$0xff]  ;;  %v72_v11 = vshrl.u32 %v71_v3, 7 }
   0x3   :  { %49 = vst [vmem:[#allocation0 + $0x28] sm:$0xff] %v48_v2  ;;  %v54_v6 = vld [vmem:[%s329_s0 + $0x28] sm:$0xff]  ;;  %51 = vst [vmem:[#allocation0 + $0x38] sm:$0xff] %v50_v4  ;;  %v56_v7 = vld [vmem:[%s329_s0 + $0x30] sm:$0xff] }
   0x4   :  { %53 = vst [vmem:[#allocation0 + $0x48] sm:$0xff] %v52_v5  ;;  %55 = vst [vmem:[#allocation0 + $0x58] sm:$0xff] %v54_v6  ;;  %v58_v8 = vld [vmem:[%s329_s0 + $0x38] sm:$0xff]  ;;  %v92_v13 = vld [vmem:[#allocation0 + $0x27] ss:$-1 sm:$0xff]  ;;  %vm73_vm0 = vcmp.lt.s32.totalorder %v72_v11, 7 }
   0x5   :  { %57 = vst [vmem:[#allocation0 + $0x68] sm:$0xff] %v56_v7  ;;  %59 = vst [vmem:[#allocation0 + $0x78] sm:$0xff] %v58_v8  ;;  %v93_v15 = vrot.slane %v92_v13, 1  ;;  %v106_v16 = vld [vmem:[#allocation0 + $0x37] ss:$-1 sm:$0xff] }
   0x6   :  { %66 = vst [vmem:[#allocation1] sm:$0xff] %v65_v10  ;;  %v107_v17 = vrot.slane %v106_v16, 1  ;;  %v120_v18 = vld [vmem:[#allocation0 + $0x47] ss:$-1 sm:$0xff]  ;;  %v134_v19 = vld [vmem:[#allocation0 + $0x57] ss:$-1 sm:$0xff] }
   0x7   :  { %80 = vst [vmem:[#allocation1 + $0x8] sm:$0xff] %v79_v14  ;;  %94 = vst [vmem:[#allocation1 + $0x10] sm:$0xff] %v93_v15  ;;  %v121_v20 = vrot.slane %v120_v18, 1  ;;  %v135_v21 = vrot.slane %v134_v19, 1  ;;  %v148_v22 = vld [vmem:[#allocation0 + $0x67] ss:$-1 sm:$0xff] }
   0x8   :  { %v162_v23 = vld [vmem:[#allocation0 + $0x77] ss:$-1 sm:$0xff]  ;;  %108 = vst [vmem:[#allocation1 + $0x18] sm:$0xff] %v107_v17  ;;  %v149_v24 = vrot.slane %v148_v22, 1 }
   0x9   :  { %v163_v25 = vrot.slane %v162_v23, 1  ;;  %v69_v26 = vld [vmem:[#allocation0 + $0xf] ss:$-1 sm:$0xff]  ;;  %v83_v27 = vld [vmem:[#allocation0 + $0x1f] ss:$-1 sm:$0xff]  ;;  %122 = vst [vmem:[#allocation1 + $0x20] sm:$0xff] %v121_v20 }
   0xa   :  { %v97_v28 = vld [vmem:[#allocation0 + $0x2f] ss:$-1 sm:$0xff]  ;;  %136 = vst [vmem:[#allocation1 + $0x28] sm:$0xff] %v135_v21  ;;  %v70_v29 = vrot.slane %v69_v26, 1  ;;  %v84_v30 = vrot.slane %v83_v27, 1  ;;  %150 = vst [vmem:[#allocation1 + $0x30] sm:$0xff] %v149_v24 }
   0xb   :  { %v98_v31 = vrot.slane %v97_v28, 1  ;;  %v111_v32 = vld [vmem:[#allocation0 + $0x3f] ss:$-1 sm:$0xff]  ;;  %164 = vst [vmem:[#allocation1 + $0x38] sm:$0xff] %v163_v25  ;;  %v125_v34 = vld [vmem:[#allocation0 + $0x4f] ss:$-1 sm:$0xff] }
   0xc   :  { %v112_v33 = vrot.slane %v111_v32, 1  ;;  %v139_v35 = vld [vmem:[#allocation0 + $0x5f] ss:$-1 sm:$0xff]  ;;  %74 = vst.msk [vmem:[#allocation1] sm:$0xff] %vm73_vm0, %v70_v29  ;;  %88 = vst.msk [vmem:[#allocation1 + $0x8] sm:$0xff] %vm73_vm0, %v84_v30  ;;  %v126_v36 = vrot.slane %v125_v34, 1 }
   0xd   :  { %102 = vst.msk [vmem:[#allocation1 + $0x10] sm:$0xff] %vm73_vm0, %v98_v31  ;;  %v140_v37 = vrot.slane %v139_v35, 1  ;;  %v153_v38 = vld [vmem:[#allocation0 + $0x6f] ss:$-1 sm:$0xff]  ;;  %v167_v39 = vld [vmem:[#allocation0 + $0x7f] ss:$-1 sm:$0xff] }
   0xe   :  { %116 = vst.msk [vmem:[#allocation1 + $0x18] sm:$0xff] %vm73_vm0, %v112_v33  ;;  %v154_v40 = vrot.slane %v153_v38, 1  ;;  %v168_v41 = vrot.slane %v167_v39, 1  ;;  %130 = vst.msk [vmem:[#allocation1 + $0x20] sm:$0xff] %vm73_vm0, %v126_v36 }
   0xf   :  { %144 = vst.msk [vmem:[#allocation1 + $0x28] sm:$0xff] %vm73_vm0, %v140_v37 }
  0x10   :  { %158 = vst.msk [vmem:[#allocation1 + $0x30] sm:$0xff] %vm73_vm0, %v154_v40  ;;  %172 = vst.msk [vmem:[#allocation1 + $0x38] sm:$0xff] %vm73_vm0, %v168_v41 }
  0x13   :  { %v214_v42 = vld [vmem:[#allocation1] sm:$0xff]  ;;  %v216_v43 = vld [vmem:[#allocation1 + $0x8] sm:$0xff] }
  0x14   :  { %v218_v44 = vld [vmem:[#allocation1 + $0x10] sm:$0xff]  ;;  %215 = vst [vmem:[%s330_s1] sm:$0xff] %v214_v42  ;;  %217 = vst [vmem:[%s330_s1 + $0x8] sm:$0xff] %v216_v43 }
  0x15   :  { %219 = vst [vmem:[%s330_s1 + $0x10] sm:$0xff] %v218_v44  ;;  %v220_v45 = vld [vmem:[#allocation1 + $0x18] sm:$0xff]  ;;  %v222_v46 = vld [vmem:[#allocation1 + $0x20] sm:$0xff] }
  0x16   :  { %221 = vst [vmem:[%s330_s1 + $0x18] sm:$0xff] %v220_v45  ;;  %v224_v47 = vld [vmem:[#allocation1 + $0x28] sm:$0xff]  ;;  %223 = vst [vmem:[%s330_s1 + $0x20] sm:$0xff] %v222_v46 }
  0x17   :  { %225 = vst [vmem:[%s330_s1 + $0x28] sm:$0xff] %v224_v47  ;;  %v226_v48 = vld [vmem:[#allocation1 + $0x30] sm:$0xff]  ;;  %v228_v49 = vld [vmem:[#allocation1 + $0x38] sm:$0xff] }
  0x18   :  { %227 = vst [vmem:[%s330_s1 + $0x30] sm:$0xff] %v226_v48  ;;  %229 = vst [vmem:[%s330_s1 + $0x38] sm:$0xff] %v228_v49 }

// kernel: _lambda_.1
= control target key start
LH: loop header
LB: loop body
LE: loop exit
PB: predicated region body
PF: predicated region fallthrough
CT: control target
= control target key end

     0   :  { %s4186_s18 = smov 0   ;;  %s4188_s19 = smov 0   ;;  %s4977_s0 = inlined_call_operand.vmem [shape: bf16[2,16,2,4], index: 0, kind: input, shape index: {}]   ;;  %s4978_s1 = inlined_call_operand.vmem [shape: bf16[2,16,2,4], index: 1, kind: input, shape index: {}]   ;;  %s4979_s2 = inlined_call_operand.vmem [shape: bf16[2,16,4,4], index: 2, kind: input, shape index: {}]   ;;  %s4980_s3 = inlined_call_operand.vmem [shape: bf16[2,16,4,4], index: 3, kind: input, shape index: {}]   ;;  %s4981_s4 = inlined_call_operand.vmem [shape: f32[2,16,2,4], index: 4, kind: output, shape index: {0}]   ;;  %s4982_s5 = inlined_call_operand.vmem [shape: f32[2,16,2,4], index: 5, kind: output, shape index: {1}]  }
   0x1   :  { %s4190_s20 = smov 0  }
   0x2 LB: > { %s28_s21 = sadd.s32 1, %s4148_s19  ;;  %p3447_p0 = scmp.ge.s32.totalorder %s4152_s20, 1  ;;  %s4152_s20 = sphi %s4190_s20, %s16_s20   ;;  %s4148_s19 = sphi %s4188_s19, %s4987_s19   ;;  %s4144_s18 = sphi %s4186_s18, %s4986_s18  }
   0x3   : > { %p30_p1 = scmp.ge.s32.totalorder %s28_s21, 2  ;;  %p262_p2 = scmp.lt.s32.totalorder %s4152_s20, 3 }
   0x5   : > { %s4989_s21 = smov (%p30_p1, %s28_s21), 0  ;;  %p263_p3 = pnand %p3447_p0, %p262_p2 }
   0x7   : > { %266 = sbr.rel (%p263_p3) target bundleno = 487 (0x1e7), region = 36 }
   0xe   : > { %p333_p4 = scmp.lt.s32.totalorder %s4144_s18, 1  ;;  %v4154_v0 = vmov 0.0   ;;  %vm4155_vm0 = vmmov 0   ;;  %vm459_vm1 = vcmask 1041408   ;;  %vm455_vm2 = vcmask 31744  }
   0xf   : > { %3656 = vmatprep.subr.bf16.mxu0 %v4154_v0  ;;  %3662 = vmatprep.subr.bf16.mxu1 %v4154_v0  ;;  %vm1945_vm3 = vcmask 25600  }
  0x10   : > { %s4991_s18 = smov (!%p333_p4, %s4144_s18), 1  ;;  %3658 = vmatprep.mubr.msk.bf16.mxu0 %vm4155_vm0, %v4154_v0  ;;  %3664 = vmatprep.mubr.msk.bf16.mxu1 %vm4155_vm0, %v4154_v0 }
  0x11   : > { %s4213_s22 = sshll.u32 %s4991_s18, 5  ;;  %s3448_s23 = sshll.u32 %s4991_s18, 4 }
  0x12   : > { %s4220_s26 = scalar_lea.vmem %s4979_s2, %s4213_s22  ;;  %s4227_s29 = scalar_lea.vmem %s4977_s0, %s3448_s23 }
  0x13   : > { %v423_v1 = vld [vmem:[%s4220_s26] sm:$0x3]  ;;  %v424_v2 = vld [vmem:[%s4220_s26 + $0x2] sm:$0x3]  ;;  %v425_v5 = vld [vmem:[%s4220_s26 + $0x4] sm:$0x3]  ;;  %s4419_s7 = scalar_lea.vmem %s4980_s3, %s4213_s22  ;;  %s4454_s10 = scalar_lea.vmem %s4978_s1, %s3448_s23 }
  0x14   : > { %v4232_v3 = vsel %vm459_vm1, %v423_v1, 0  ;;  %v4235_v4 = vsel %vm459_vm1, %v424_v2, 0  ;;  %v4241_v6 = vld [vmem:[%s4227_s29] sm:$0x1]  ;;  %v4244_v7 = vld [vmem:[%s4227_s29 + $0x1] sm:$0x1]  ;;  %s4880_s13 = scalar_lea.vmem %s4981_s4, %s4213_s22  ;;  %s4934_s16 = scalar_lea.vmem %s4982_s5, %s4213_s22 }
  0x15   : > { %3657 = vmatpush3.bf16.msra.mxu0 %v4232_v3  ;;  %3663 = vmatpush3.bf16.msra.mxu1 %v4235_v4  ;;  %v426_v8 = vld [vmem:[%s4220_s26 + $0x6] sm:$0x3]  ;;  %v4250_v9 = vsel %vm459_vm1, %v425_v5, 0  ;;  %v427_v11 = vld [vmem:[%s4220_s26 + $0x8] sm:$0x3] }
  0x16   : > { %3668 = vmatprep.subr.bf16.mxu0 %v4154_v0  ;;  %3674 = vmatprep.subr.bf16.mxu1 %v4154_v0  ;;  %v4253_v10 = vsel %vm459_vm1, %v426_v8, 0  ;;  %v428_v12 = vld [vmem:[%s4220_s26 + $0xa] sm:$0x3]  ;;  %v4270_v13 = vld [vmem:[%s4227_s29 + $0x2] sm:$0x1]  ;;  %v4276_v15 = vsel %vm459_vm1, %v427_v11, 0 }
  0x17   : > { %v4273_v14 = vld [vmem:[%s4227_s29 + $0x3] sm:$0x1]  ;;  %v4279_v16 = vsel %vm459_vm1, %v428_v12, 0  ;;  %v429_v17 = vld [vmem:[%s4220_s26 + $0xc] sm:$0x3] }
  0x18   : > { %3659 = vmatmul.mubr.msk.bf16.vlgmr.msra.gmra.mrb[0].mxu0 %vm455_vm2, %v4241_v6  ;;  %3665 = vmatmul.mubr.msk.bf16.vlgmr.msra.gmra.mrb[0].mxu1 %vm455_vm2, %v4244_v7  ;;  %v430_v18 = vld [vmem:[%s4220_s26 + $0xe] sm:$0x3]  ;;  %v4296_v19 = vld [vmem:[%s4227_s29 + $0x4] sm:$0x1]  ;;  %v4299_v20 = vld [vmem:[%s4227_s29 + $0x5] sm:$0x1] }
  0x19   : > { %3669 = vmatpush3.bf16.msra.mxu0 %v4250_v9  ;;  %3675 = vmatpush3.bf16.msra.mxu1 %v4253_v10  ;;  %v4302_v21 = vsel %vm459_vm1, %v429_v17, 0  ;;  %v4305_v22 = vsel %vm459_vm1, %v430_v18, 0  ;;  %v431_v23 = vld [vmem:[%s4220_s26 + $0x10] sm:$0x3]  ;;  %v432_v24 = vld [vmem:[%s4220_s26 + $0x12] sm:$0x3] }
  0x1a   : > { %3670 = vmatprep.mubr.msk.bf16.mxu0 %vm4155_vm0, %v4154_v0  ;;  %3676 = vmatprep.mubr.msk.bf16.mxu1 %vm4155_vm0, %v4154_v0  ;;  %v4322_v25 = vld [vmem:[%s4227_s29 + $0x6] sm:$0x1]  ;;  %v4325_v26 = vld [vmem:[%s4227_s29 + $0x7] sm:$0x1]  ;;  %v4328_v27 = vsel %vm459_vm1, %v431_v23, 0  ;;  %v4331_v28 = vsel %vm459_vm1, %v432_v24, 0 }
  0x1b   : > { %3680 = vmatprep.subr.bf16.mxu0 %v4154_v0  ;;  %3686 = vmatprep.subr.bf16.mxu1 %v4154_v0  ;;  %v433_v29 = vld [vmem:[%s4220_s26 + $0x14] sm:$0x3]  ;;  %v434_v30 = vld [vmem:[%s4220_s26 + $0x16] sm:$0x3]  ;;  %v4348_v31 = vld [vmem:[%s4227_s29 + $0x8] sm:$0x1] }
  0x1c   : > { %v4351_v32 = vld [vmem:[%s4227_s29 + $0x9] sm:$0x1]  ;;  %v4354_v33 = vsel %vm459_vm1, %v433_v29, 0  ;;  %v4357_v34 = vsel %vm459_vm1, %v434_v30, 0  ;;  %v435_v35 = vld [vmem:[%s4220_s26 + $0x18] sm:$0x3] }
  0x1d   : > { %v436_v36 = vld [vmem:[%s4220_s26 + $0x1a] sm:$0x3]  ;;  %v4374_v37 = vld [vmem:[%s4227_s29 + $0xa] sm:$0x1]  ;;  %v4377_v38 = vld [vmem:[%s4227_s29 + $0xb] sm:$0x1] }
  0x1e   : > { %v4380_v39 = vsel %vm459_vm1, %v435_v35, 0  ;;  %v4383_v40 = vsel %vm459_vm1, %v436_v36, 0  ;;  %v437_v41 = vld [vmem:[%s4220_s26 + $0x1c] sm:$0x3]  ;;  %v438_v42 = vld [vmem:[%s4220_s26 + $0x1e] sm:$0x3] }
  0x1f   : > { %v4400_v43 = vld [vmem:[%s4227_s29 + $0xc] sm:$0x1]  ;;  %v4403_v44 = vld [vmem:[%s4227_s29 + $0xd] sm:$0x1]  ;;  %v4406_v45 = vsel %vm459_vm1, %v437_v41, 0  ;;  %v4409_v46 = vsel %vm459_vm1, %v438_v42, 0 }
  0x20   : > { %3671 = vmatmul.mubr.msk.bf16.vlgmr.msra.gmra.mrb[4].mxu0 %vm455_vm2, %v4270_v13  ;;  %3677 = vmatmul.mubr.msk.bf16.vlgmr.msra.gmra.mrb[4].mxu1 %vm455_vm2, %v4273_v14  ;;  %v439_v47 = vld [vmem:[%s4419_s7] sm:$0x3]  ;;  %v440_v48 = vld [vmem:[%s4419_s7 + $0x2] sm:$0x3]  ;;  %v4432_v49 = vld [vmem:[%s4227_s29 + $0xe] sm:$0x1] }
  0x21   : > { %3681 = vmatpush3.bf16.msra.mxu0 %v4276_v15  ;;  %3687 = vmatpush3.bf16.msra.mxu1 %v4279_v16  ;;  %v4435_v50 = vld [vmem:[%s4227_s29 + $0xf] sm:$0x1]  ;;  %v4438_v51 = vsel %vm459_vm1, %v439_v47, 0  ;;  %v4441_v52 = vsel %vm459_vm1, %v440_v48, 0  ;;  %v441_v53 = vld [vmem:[%s4419_s7 + $0x4] sm:$0x3] }
  0x22   : > { %3682 = vmatprep.mubr.msk.bf16.mxu0 %vm4155_vm0, %v4154_v0  ;;  %3688 = vmatprep.mubr.msk.bf16.mxu1 %vm4155_vm0, %v4154_v0  ;;  %4984 = vst [vmem:[#allocation2_spill] sm:$0xff] %v4435_v50  ;;  %v442_v54 = vld [vmem:[%s4419_s7 + $0x6] sm:$0x3]  ;;  %v4465_v55 = vld [vmem:[%s4454_s10] sm:$0x1]  ;;  %v4471_v57 = vsel %vm459_vm1, %v441_v53, 0 }
  0x23   : > { %3692 = vmatprep.subr.bf16.mxu0 %v4154_v0  ;;  %3698 = vmatprep.subr.bf16.mxu1 %v4154_v0  ;;  %v4468_v56 = vld [vmem:[%s4454_s10 + $0x1] sm:$0x1]  ;;  %v4474_v58 = vsel %vm459_vm1, %v442_v54, 0  ;;  %v443_v59 = vld [vmem:[%s4419_s7 + $0x8] sm:$0x3] }
  0x24   : > { %v444_v60 = vld [vmem:[%s4419_s7 + $0xa] sm:$0x3]  ;;  %v4491_v61 = vld [vmem:[%s4454_s10 + $0x2] sm:$0x1]  ;;  %v4494_v62 = vld [vmem:[%s4454_s10 + $0x3] sm:$0x1] }
  0x25   : > { %v4497_v63 = vsel %vm459_vm1, %v443_v59, 0  ;;  %v4500_v1 = vsel %vm459_vm1, %v444_v60, 0  ;;  %v445_v2 = vld [vmem:[%s4419_s7 + $0xc] sm:$0x3]  ;;  %v446_v5 = vld [vmem:[%s4419_s7 + $0xe] sm:$0x3] }
  0x26   : > { %v4517_v8 = vld [vmem:[%s4454_s10 + $0x4] sm:$0x1]  ;;  %v4520_v11 = vld [vmem:[%s4454_s10 + $0x5] sm:$0x1]  ;;  %v4523_v12 = vsel %vm459_vm1, %v445_v2, 0  ;;  %v4526_v17 = vsel %vm459_vm1, %v446_v5, 0 }
  0x27   : > { %v447_v18 = vld [vmem:[%s4419_s7 + $0x10] sm:$0x3]  ;;  %v448_v23 = vld [vmem:[%s4419_s7 + $0x12] sm:$0x3]  ;;  %v4543_v24 = vld [vmem:[%s4454_s10 + $0x6] sm:$0x1] }
  0x28   : > { %3683 = vmatmul.mubr.msk.bf16.vlgmr.msra.gmra.mrb[8].mxu0 %vm455_vm2, %v4296_v19  ;;  %3689 = vmatmul.mubr.msk.bf16.vlgmr.msra.gmra.mrb[8].mxu1 %vm455_vm2, %v4299_v20  ;;  %v4546_v29 = vld [vmem:[%s4454_s10 + $0x7] sm:$0x1]  ;;  %v4549_v30 = vsel %vm459_vm1, %v447_v18, 0  ;;  %v4552_v35 = vsel %vm459_vm1, %v448_v23, 0  ;;  %v449_v36 = vld [vmem:[%s4419_s7 + $0x14] sm:$0x3] }
  0x29   : > { %3693 = vmatpush3.bf16.msra.mxu0 %v4302_v21  ;;  %3699 = vmatpush3.bf16.msra.mxu1 %v4305_v22  ;;  %v450_v41 = vld [vmem:[%s4419_s7 + $0x16] sm:$0x3]  ;;  %v4569_v42 = vld [vmem:[%s4454_s10 + $0x8] sm:$0x1]  ;;  %v4572_v47 = vld [vmem:[%s4454_s10 + $0x9] sm:$0x1] }
  0x2a   : > { %3694 = vmatprep.mubr.msk.bf16.mxu0 %vm4155_vm0, %v4154_v0  ;;  %3700 = vmatprep.mubr.msk.bf16.mxu1 %vm4155_vm0, %v4154_v0  ;;  %v4575_v48 = vsel %vm459_vm1, %v449_v36, 0  ;;  %v4578_v53 = vsel %vm459_vm1, %v450_v41, 0  ;;  %v451_v54 = vld [vmem:[%s4419_s7 + $0x18] sm:$0x3]  ;;  %v452_v59 = vld [vmem:[%s4419_s7 + $0x1a] sm:$0x3] }
  0x2b   : > { %3704 = vmatprep.subr.bf16.mxu0 %v4154_v0  ;;  %3710 = vmatprep.subr.bf16.mxu1 %v4154_v0  ;;  %v4595_v60 = vld [vmem:[%s4454_s10 + $0xa] sm:$0x1]  ;;  %v4598_v2 = vld [vmem:[%s4454_s10 + $0xb] sm:$0x1]  ;;  %v4601_v5 = vsel %vm459_vm1, %v451_v54, 0  ;;  %v4604_v18 = vsel %vm459_vm1, %v452_v59, 0 }
  0x2c   : > { %v453_v23 = vld [vmem:[%s4419_s7 + $0x1c] sm:$0x3]  ;;  %v454_v36 = vld [vmem:[%s4419_s7 + $0x1e] sm:$0x3]  ;;  %v4621_v41 = vld [vmem:[%s4454_s10 + $0xc] sm:$0x1] }
  0x2d   : > { %v4624_v54 = vld [vmem:[%s4454_s10 + $0xd] sm:$0x1]  ;;  %v4627_v59 = vsel %vm459_vm1, %v453_v23, 0  ;;  %v4645_v23 = vld [vmem:[%s4454_s10 + $0xe] sm:$0x1] }
  0x30   : > { %3695 = vmatmul.mubr.msk.bf16.vlgmr.msra.gmra.mrb[12].mxu0 %vm455_vm2, %v4322_v25  ;;  %3701 = vmatmul.mubr.msk.bf16.vlgmr.msra.gmra.mrb[12].mxu1 %vm455_vm2, %v4325_v26 }
  0x31   : > { %3705 = vmatpush3.bf16.msra.mxu0 %v4328_v27  ;;  %3711 = vmatpush3.bf16.msra.mxu1 %v4331_v28 }
  0x32   : > { %3706 = vmatprep.mubr.msk.bf16.mxu0 %vm4155_vm0, %v4154_v0  ;;  %3712 = vmatprep.mubr.msk.bf16.mxu1 %vm4155_vm0, %v4154_v0 }
  0x33   : > { %3716 = vmatprep.subr.bf16.mxu0 %v4154_v0  ;;  %3722 = vmatprep.subr.bf16.mxu1 %v4154_v0 }
  0x38   : > { %3707 = vmatmul.mubr.msk.bf16.vlgmr.msra.gmra.mrb[16].mxu0 %vm455_vm2, %v4348_v31  ;;  %3713 = vmatmul.mubr.msk.bf16.vlgmr.msra.gmra.mrb[16].mxu1 %vm455_vm2, %v4351_v32 }
  0x39   : > { %3717 = vmatpush3.bf16.msra.mxu0 %v4354_v33  ;;  %3723 = vmatpush3.bf16.msra.mxu1 %v4357_v34 }
  0x3a   : > { %3718 = vmatprep.mubr.msk.bf16.mxu0 %vm4155_vm0, %v4154_v0  ;;  %3724 = vmatprep.mubr.msk.bf16.mxu1 %vm4155_vm0, %v4154_v0 }
  0x3b   : > { %3728 = vmatprep.subr.bf16.mxu0 %v4154_v0  ;;  %3734 = vmatprep.subr.bf16.mxu1 %v4154_v0 }
  0x40   : > { %3719 = vmatmul.mubr.msk.bf16.vlgmr.msra.gmra.mrb[20].mxu0 %vm455_vm2, %v4374_v37  ;;  %3725 = vmatmul.mubr.msk.bf16.vlgmr.msra.gmra.mrb[20].mxu1 %vm455_vm2, %v4377_v38 }
  0x41   : > { %3729 = vmatpush3.bf16.msra.mxu0 %v4380_v39  ;;  %3735 = vmatpush3.bf16.msra.mxu1 %v4383_v40 }
  0x42   : > { %3730 = vmatprep.mubr.msk.bf16.mxu0 %vm4155_vm0, %v4154_v0  ;;  %3736 = vmatprep.mubr.msk.bf16.mxu1 %vm4155_vm0, %v4154_v0 }
  0x43   : > { %3740 = vmatprep.subr.bf16.mxu0 %v4154_v0  ;;  %3746 = vmatprep.subr.bf16.mxu1 %v4154_v0 }
  0x48   : > { %3731 = vmatmul.mubr.msk.bf16.vlgmr.msra.gmra.mrb[24].mxu0 %vm455_vm2, %v4400_v43  ;;  %3737 = vmatmul.mubr.msk.bf16.vlgmr.msra.gmra.mrb[24].mxu1 %vm455_vm2, %v4403_v44 }
  0x49   : > { %3741 = vmatpush3.bf16.msra.mxu0 %v4406_v45  ;;  %3747 = vmatpush3.bf16.msra.mxu1 %v4409_v46 }
  0x4a   : > { %3742 = vmatprep.mubr.msk.bf16.mxu0 %vm4155_vm0, %v4154_v0  ;;  %3748 = vmatprep.mubr.msk.bf16.mxu1 %vm4155_vm0, %v4154_v0 }
  0x4b   : > { %3752 = vmatprep.subr.bf16.mxu0 %v4154_v0  ;;  %3758 = vmatprep.subr.bf16.mxu1 %v4154_v0 }
  0x50   : > { %3743 = vmatmul.mubr.msk.bf16.vlgmr.msra.gmra.mrb[28].mxu0 %vm455_vm2, %v4432_v49  ;;  %3749 = vmatmul.mubr.msk.bf16.vlgmr.msra.gmra.mrb[28].mxu1 %vm455_vm2, %v4435_v50  ;;  %v4630_v50 = vsel %vm459_vm1, %v454_v36, 0  ;;  %v4648_v36 = vld [vmem:[%s4454_s10 + $0xf] sm:$0x1] }
  0x51   : > { %3753 = vmatpush3.bf16.msra.mxu0 %v4438_v51  ;;  %3759 = vmatpush3.bf16.msra.mxu1 %v4441_v52 }
  0x52   : > { %3754 = vmatprep.mubr.msk.bf16.mxu0 %vm4155_vm0, %v4154_v0  ;;  %3760 = vmatprep.mubr.msk.bf16.mxu1 %vm4155_vm0, %v4154_v0 }
  0x53   : > { %3764 = vmatprep.subr.bf16.mxu0 %v4154_v0  ;;  %3770 = vmatprep.subr.bf16.mxu1 %v4154_v0 }
  0x58   : > { %3755 = vmatmul.mubr.msk.bf16.vlgmr.msra.gmra.mrb[32].mxu0 %vm455_vm2, %v4465_v55  ;;  %3761 = vmatmul.mubr.msk.bf16.vlgmr.msra.gmra.mrb[32].mxu1 %vm455_vm2, %v4468_v56 }
  0x59   : > { %3765 = vmatpush3.bf16.msra.mxu0 %v4471_v57  ;;  %3771 = vmatpush3.bf16.msra.mxu1 %v4474_v58 }
  0x5a   : > { %3766 = vmatprep.mubr.msk.bf16.mxu0 %vm4155_vm0, %v4154_v0  ;;  %3772 = vmatprep.mubr.msk.bf16.mxu1 %vm4155_vm0, %v4154_v0 }
  0x5b   : > { %3776 = vmatprep.subr.bf16.mxu0 %v4154_v0  ;;  %3782 = vmatprep.subr.bf16.mxu1 %v4154_v0 }
  0x60   : > { %3767 = vmatmul.mubr.msk.bf16.vlgmr.msra.gmra.mrb[36].mxu0 %vm455_vm2, %v4491_v61  ;;  %3773 = vmatmul.mubr.msk.bf16.vlgmr.msra.gmra.mrb[36].mxu1 %vm455_vm2, %v4494_v62 }
  0x61   : > { %3777 = vmatpush3.bf16.msra.mxu0 %v4497_v63  ;;  %3783 = vmatpush3.bf16.msra.mxu1 %v4500_v1 }
  0x62   : > { %3778 = vmatprep.mubr.msk.bf16.mxu0 %vm4155_vm0, %v4154_v0  ;;  %3784 = vmatprep.mubr.msk.bf16.mxu1 %vm4155_vm0, %v4154_v0 }
  0x63   : > { %3788 = vmatprep.subr.bf16.mxu0 %v4154_v0  ;;  %3794 = vmatprep.subr.bf16.mxu1 %v4154_v0 }
  0x68   : > { %3779 = vmatmul.mubr.msk.bf16.vlgmr.msra.gmra.mrb[40].mxu0 %vm455_vm2, %v4517_v8  ;;  %3785 = vmatmul.mubr.msk.bf16.vlgmr.msra.gmra.mrb[40].mxu1 %vm455_vm2, %v4520_v11 }
  0x69   : > { %3789 = vmatpush3.bf16.msra.mxu0 %v4523_v12  ;;  %3795 = vmatpush3.bf16.msra.mxu1 %v4526_v17 }
  0x6a   : > { %3790 = vmatprep.mubr.msk.bf16.mxu0 %vm4155_vm0, %v4154_v0  ;;  %3796 = vmatprep.mubr.msk.bf16.mxu1 %vm4155_vm0, %v4154_v0 }
  0x6b   : > { %3800 = vmatprep.subr.bf16.mxu0 %v4154_v0  ;;  %3806 = vmatprep.subr.bf16.mxu1 %v4154_v0 }
  0x70   : > { %3791 = vmatmul.mubr.msk.bf16.vlgmr.msra.gmra.mrb[44].mxu0 %vm455_vm2, %v4543_v24  ;;  %3797 = vmatmul.mubr.msk.bf16.vlgmr.msra.gmra.mrb[44].mxu1 %vm455_vm2, %v4546_v29 }
  0x71   : > { %3801 = vmatpush3.bf16.msra.mxu0 %v4549_v30  ;;  %3807 = vmatpush3.bf16.msra.mxu1 %v4552_v35 }
  0x72   : > { %3802 = vmatprep.mubr.msk.bf16.mxu0 %vm4155_vm0, %v4154_v0  ;;  %3808 = vmatprep.mubr.msk.bf16.mxu1 %vm4155_vm0, %v4154_v0 }
  0x73   : > { %3812 = vmatprep.subr.bf16.mxu0 %v4154_v0  ;;  %3818 = vmatprep.subr.bf16.mxu1 %v4154_v0 }
  0x78   : > { %3803 = vmatmul.mubr.msk.bf16.vlgmr.msra.gmra.mrb[48].mxu0 %vm455_vm2, %v4569_v42  ;;  %3809 = vmatmul.mubr.msk.bf16.vlgmr.msra.gmra.mrb[48].mxu1 %vm455_vm2, %v4572_v47 }
  0x79   : > { %3813 = vmatpush3.bf16.msra.mxu0 %v4575_v48  ;;  %3819 = vmatpush3.bf16.msra.mxu1 %v4578_v53 }
  0x7a   : > { %3814 = vmatprep.mubr.msk.bf16.mxu0 %vm4155_vm0, %v4154_v0  ;;  %3820 = vmatprep.mubr.msk.bf16.mxu1 %vm4155_vm0, %v4154_v0 }
  0x7b   : > { %3824 = vmatprep.subr.bf16.mxu0 %v4154_v0  ;;  %3830 = vmatprep.subr.bf16.mxu1 %v4154_v0 }
  0x80   : > { %3815 = vmatmul.mubr.msk.bf16.vlgmr.msra.gmra.mrb[52].mxu0 %vm455_vm2, %v4595_v60  ;;  %3821 = vmatmul.mubr.msk.bf16.vlgmr.msra.gmra.mrb[52].mxu1 %vm455_vm2, %v4598_v2 }
  0x81   : > { %3825 = vmatpush3.bf16.msra.mxu0 %v4601_v5  ;;  %3831 = vmatpush3.bf16.msra.mxu1 %v4604_v18 }
  0x82   : > { %3826 = vmatprep.mubr.msk.bf16.mxu0 %vm4155_vm0, %v4154_v0  ;;  %3832 = vmatprep.mubr.msk.bf16.mxu1 %vm4155_vm0, %v4154_v0 }
  0x83   : > { %3836 = vmatprep.subr.bf16.mxu0 %v4154_v0  ;;  %3842 = vmatprep.subr.bf16.mxu1 %v4154_v0 }
  0x88   : > { %3827 = vmatmul.mubr.msk.bf16.vlgmr.msra.gmra.mrb[56].mxu0 %vm455_vm2, %v4621_v41  ;;  %3833 = vmatmul.mubr.msk.bf16.vlgmr.msra.gmra.mrb[56].mxu1 %vm455_vm2, %v4624_v54 }
  0x89   : > { %3837 = vmatpush3.bf16.msra.mxu0 %v4627_v59  ;;  %3843 = vmatpush3.bf16.msra.mxu1 %v4630_v50 }
  0x8a   : > { %3838 = vmatprep.mubr.msk.bf16.mxu0 %vm4155_vm0, %v4154_v0  ;;  %3844 = vmatprep.mubr.msk.bf16.mxu1 %vm4155_vm0, %v4154_v0 }
  0x8b   : > { %3848 = vmatprep.subr.bf16.mxu0 %v4154_v0  ;;  %3854 = vmatprep.subr.bf16.mxu1 %v4154_v0 }
  0x90   : > { %3839 = vmatmul.mubr.msk.bf16.vlgmr.msra.gmra.mrb[60].mxu0 %vm455_vm2, %v4645_v23  ;;  %3845 = vmatmul.mubr.msk.bf16.vlgmr.msra.gmra.mrb[60].mxu1 %vm455_vm2, %v4648_v36 }
  0x91   : > { %3849 = vmatpush3.bf16.msra.mxu0 %v4232_v3  ;;  %3855 = vmatpush3.bf16.msra.mxu1 %v4235_v4 }
  0x92   : > { %3850 = vmatprep.mubr.msk.bf16.mxu0 %vm4155_vm0, %v4154_v0  ;;  %3856 = vmatprep.mubr.msk.bf16.mxu1 %vm4155_vm0, %v4154_v0 }
  0x93   : > { %3860 = vmatprep.subr.bf16.mxu0 %v4154_v0  ;;  %3866 = vmatprep.subr.bf16.mxu1 %v4154_v0 }
  0x98   : > { %3851 = vmatmul.mubr.msk.bf16.vlgmr.msra.gmra.mrb[64].mxu0 %vm455_vm2, %v4465_v55  ;;  %3857 = vmatmul.mubr.msk.bf16.vlgmr.msra.gmra.mrb[64].mxu1 %vm455_vm2, %v4468_v56 }
  0x99   : > { %3861 = vmatpush3.bf16.msra.mxu0 %v4250_v9  ;;  %3867 = vmatpush3.bf16.msra.mxu1 %v4253_v10 }
  0x9a   : > { %3862 = vmatprep.mubr.msk.bf16.mxu0 %vm4155_vm0, %v4154_v0  ;;  %3868 = vmatprep.mubr.msk.bf16.mxu1 %vm4155_vm0, %v4154_v0 }
  0x9b   : > { %3872 = vmatprep.subr.bf16.mxu0 %v4154_v0  ;;  %3878 = vmatprep.subr.bf16.mxu1 %v4154_v0 }
  0xa0   : > { %3863 = vmatmul.mubr.msk.bf16.vlgmr.msra.gmra.mrb[68].mxu0 %vm455_vm2, %v4491_v61  ;;  %3869 = vmatmul.mubr.msk.bf16.vlgmr.msra.gmra.mrb[68].mxu1 %vm455_vm2, %v4494_v62 }
  0xa1   : > { %3873 = vmatpush3.bf16.msra.mxu0 %v4276_v15  ;;  %3879 = vmatpush3.bf16.msra.mxu1 %v4279_v16 }
  0xa2   : > { %3874 = vmatprep.mubr.msk.bf16.mxu0 %vm4155_vm0, %v4154_v0  ;;  %3880 = vmatprep.mubr.msk.bf16.mxu1 %vm4155_vm0, %v4154_v0 }
  0xa3   : > { %3884 = vmatprep.subr.bf16.mxu0 %v4154_v0  ;;  %3890 = vmatprep.subr.bf16.mxu1 %v4154_v0 }
  0xa8   : > { %3875 = vmatmul.mubr.msk.bf16.vlgmr.msra.gmra.mrb[72].mxu0 %vm455_vm2, %v4517_v8  ;;  %3881 = vmatmul.mubr.msk.bf16.vlgmr.msra.gmra.mrb[72].mxu1 %vm455_vm2, %v4520_v11 }
  0xa9   : > { %3885 = vmatpush3.bf16.msra.mxu0 %v4302_v21  ;;  %3891 = vmatpush3.bf16.msra.mxu1 %v4305_v22 }
  0xaa   : > { %3886 = vmatprep.mubr.msk.bf16.mxu0 %vm4155_vm0, %v4154_v0  ;;  %3892 = vmatprep.mubr.msk.bf16.mxu1 %vm4155_vm0, %v4154_v0 }
  0xab   : > { %3896 = vmatprep.subr.bf16.mxu0 %v4154_v0  ;;  %3902 = vmatprep.subr.bf16.mxu1 %v4154_v0 }
  0xb0   : > { %3887 = vmatmul.mubr.msk.bf16.vlgmr.msra.gmra.mrb[76].mxu0 %vm455_vm2, %v4543_v24  ;;  %3893 = vmatmul.mubr.msk.bf16.vlgmr.msra.gmra.mrb[76].mxu1 %vm455_vm2, %v4546_v29 }
  0xb1   : > { %3897 = vmatpush3.bf16.msra.mxu0 %v4328_v27  ;;  %3903 = vmatpush3.bf16.msra.mxu1 %v4331_v28 }
  0xb2   : > { %3898 = vmatprep.mubr.msk.bf16.mxu0 %vm4155_vm0, %v4154_v0  ;;  %3904 = vmatprep.mubr.msk.bf16.mxu1 %vm4155_vm0, %v4154_v0 }
  0xb3   : > { %3908 = vmatprep.subr.bf16.mxu0 %v4154_v0  ;;  %3914 = vmatprep.subr.bf16.mxu1 %v4154_v0 }
  0xb8   : > { %3899 = vmatmul.mubr.msk.bf16.vlgmr.msra.gmra.mrb[80].mxu0 %vm455_vm2, %v4569_v42  ;;  %3905 = vmatmul.mubr.msk.bf16.vlgmr.msra.gmra.mrb[80].mxu1 %vm455_vm2, %v4572_v47 }
  0xb9   : > { %3909 = vmatpush3.bf16.msra.mxu0 %v4354_v33  ;;  %3915 = vmatpush3.bf16.msra.mxu1 %v4357_v34 }
  0xba   : > { %3910 = vmatprep.mubr.msk.bf16.mxu0 %vm4155_vm0, %v4154_v0  ;;  %3916 = vmatprep.mubr.msk.bf16.mxu1 %vm4155_vm0, %v4154_v0 }
  0xbb   : > { %3920 = vmatprep.subr.bf16.mxu0 %v4154_v0  ;;  %3926 = vmatprep.subr.bf16.mxu1 %v4154_v0 }
  0xc0   : > { %3911 = vmatmul.mubr.msk.bf16.vlgmr.msra.gmra.mrb[84].mxu0 %vm455_vm2, %v4595_v60  ;;  %3917 = vmatmul.mubr.msk.bf16.vlgmr.msra.gmra.mrb[84].mxu1 %vm455_vm2, %v4598_v2 }
  0xc1   : > { %3921 = vmatpush3.bf16.msra.mxu0 %v4380_v39  ;;  %3927 = vmatpush3.bf16.msra.mxu1 %v4383_v40 }
  0xc2   : > { %3922 = vmatprep.mubr.msk.bf16.mxu0 %vm4155_vm0, %v4154_v0  ;;  %3928 = vmatprep.mubr.msk.bf16.mxu1 %vm4155_vm0, %v4154_v0 }
  0xc3   : > { %3932 = vmatprep.subr.bf16.mxu0 %v4154_v0  ;;  %3938 = vmatprep.subr.bf16.mxu1 %v4154_v0 }
  0xc8   : > { %3923 = vmatmul.mubr.msk.bf16.vlgmr.msra.gmra.mrb[88].mxu0 %vm455_vm2, %v4621_v41  ;;  %3929 = vmatmul.mubr.msk.bf16.vlgmr.msra.gmra.mrb[88].mxu1 %vm455_vm2, %v4624_v54 }
  0xc9   : > { %3933 = vmatpush3.bf16.msra.mxu0 %v4406_v45  ;;  %3939 = vmatpush3.bf16.msra.mxu1 %v4409_v46 }
  0xca   : > { %3934 = vmatprep.mubr.msk.bf16.mxu0 %vm4155_vm0, %v4154_v0  ;;  %3940 = vmatprep.mubr.msk.bf16.mxu1 %vm4155_vm0, %v4154_v0 }
  0xcb   : > { %3944 = vmatprep.subr.bf16.mxu0 %v4154_v0  ;;  %3950 = vmatprep.subr.bf16.mxu1 %v4154_v0 }
  0xd0   : > { %3935 = vmatmul.mubr.msk.bf16.vlgmr.msra.gmra.mrb[92].mxu0 %vm455_vm2, %v4645_v23  ;;  %3941 = vmatmul.mubr.msk.bf16.vlgmr.msra.gmra.mrb[92].mxu1 %vm455_vm2, %v4648_v36 }
  0xd1   : > { %3945 = vmatpush3.bf16.msra.mxu0 %v4438_v51  ;;  %3951 = vmatpush3.bf16.msra.mxu1 %v4441_v52 }
  0xd2   : > { %3946 = vmatprep.mubr.msk.bf16.mxu0 %vm4155_vm0, %v4154_v0  ;;  %3952 = vmatprep.mubr.msk.bf16.mxu1 %vm4155_vm0, %v4154_v0 }
  0xd3   : > { %3956 = vmatprep.subr.bf16.mxu0 %v4154_v0  ;;  %3962 = vmatprep.subr.bf16.mxu1 %v4154_v0 }
  0xd8   : > { %3947 = vmatmul.mubr.msk.bf16.vlgmr.msra.gmra.mrb[64].mxu0 %vm455_vm2, %v4241_v6  ;;  %3953 = vmatmul.mubr.msk.bf16.vlgmr.msra.gmra.mrb[64].mxu1 %vm455_vm2, %v4244_v7 }
  0xd9   : > { %3957 = vmatpush3.bf16.msra.mxu0 %v4471_v57  ;;  %3963 = vmatpush3.bf16.msra.mxu1 %v4474_v58 }
  0xda   : > { %3958 = vmatprep.mubr.msk.bf16.mxu0 %vm4155_vm0, %v4154_v0  ;;  %3964 = vmatprep.mubr.msk.bf16.mxu1 %vm4155_vm0, %v4154_v0 }
  0xdb   : > { %3968 = vmatprep.subr.bf16.mxu0 %v4154_v0  ;;  %3974 = vmatprep.subr.bf16.mxu1 %v4154_v0 }
  0xe0   : > { %3959 = vmatmul.mubr.msk.bf16.vlgmr.msra.gmra.mrb[68].mxu0 %vm455_vm2, %v4270_v13  ;;  %3965 = vmatmul.mubr.msk.bf16.vlgmr.msra.gmra.mrb[68].mxu1 %vm455_vm2, %v4273_v14 }
  0xe1   : > { %3969 = vmatpush3.bf16.msra.mxu0 %v4497_v63  ;;  %3975 = vmatpush3.bf16.msra.mxu1 %v4500_v1 }
  0xe2   : > { %3970 = vmatprep.mubr.msk.bf16.mxu0 %vm4155_vm0, %v4154_v0  ;;  %3976 = vmatprep.mubr.msk.bf16.mxu1 %vm4155_vm0, %v4154_v0 }
  0xe3   : > { %3980 = vmatprep.subr.bf16.mxu0 %v4154_v0  ;;  %3986 = vmatprep.subr.bf16.mxu1 %v4154_v0 }
  0xe8   : > { %3971 = vmatmul.mubr.msk.bf16.vlgmr.msra.gmra.mrb[72].mxu0 %vm455_vm2, %v4296_v19  ;;  %3977 = vmatmul.mubr.msk.bf16.vlgmr.msra.gmra.mrb[72].mxu1 %vm455_vm2, %v4299_v20 }
  0xe9   : > { %3981 = vmatpush3.bf16.msra.mxu0 %v4523_v12  ;;  %3987 = vmatpush3.bf16.msra.mxu1 %v4526_v17 }
  0xea   : > { %3982 = vmatprep.mubr.msk.bf16.mxu0 %vm4155_vm0, %v4154_v0  ;;  %3988 = vmatprep.mubr.msk.bf16.mxu1 %vm4155_vm0, %v4154_v0 }
  0xeb   : > { %v4792_v3 = vpop.f32.mrb[0].mxu0  ;;  %v4794_v4 = vpop.f32.mrb[0].mxu1  ;;  %3992 = vmatprep.subr.bf16.mxu0 %v4154_v0  ;;  %3998 = vmatprep.subr.bf16.mxu1 %v4154_v0 }
  0xec   : > { %v3660_v6 = vpop.f32.mrb[1].mxu0  ;;  %v3666_v7 = vpop.f32.mrb[1].mxu1 }
  0xed   : > { %v500_v9 = vpop.f32.mrb[2].mxu0  ;;  %v546_v10 = vpop.f32.mrb[2].mxu1 }
  0xee   : > { %v3661_v13 = vpop.f32.mrb[3].mxu0  ;;  %v3667_v14 = vpop.f32.mrb[3].mxu1 }
  0xf0   : > { %3983 = vmatmul.mubr.msk.bf16.vlgmr.msra.gmra.mrb[76].mxu0 %vm455_vm2, %v4322_v25  ;;  %3989 = vmatmul.mubr.msk.bf16.vlgmr.msra.gmra.mrb[76].mxu1 %vm455_vm2, %v4325_v26 }
  0xf1   : > { %3993 = vmatpush3.bf16.msra.mxu0 %v4549_v30  ;;  %3999 = vmatpush3.bf16.msra.mxu1 %v4552_v35 }
  0xf2   : > { %3994 = vmatprep.mubr.msk.bf16.mxu0 %vm4155_vm0, %v4154_v0  ;;  %4000 = vmatprep.mubr.msk.bf16.mxu1 %vm4155_vm0, %v4154_v0 }
  0xf3   : > { %v4808_v15 = vpop.f32.mrb[4].mxu0  ;;  %v4810_v16 = vpop.f32.mrb[4].mxu1  ;;  %4004 = vmatprep.subr.bf16.mxu0 %v4154_v0  ;;  %4010 = vmatprep.subr.bf16.mxu1 %v4154_v0 }
  0xf4   : > { %v3672_v19 = vpop.f32.mrb[5].mxu0  ;;  %v3678_v20 = vpop.f32.mrb[5].mxu1 }
  0xf5   : > { %v592_v21 = vpop.f32.mrb[6].mxu0  ;;  %v638_v22 = vpop.f32.mrb[6].mxu1 }
  0xf6   : > { %v3673_v25 = vpop.f32.mrb[7].mxu0  ;;  %v3679_v26 = vpop.f32.mrb[7].mxu1 }
  0xf8   : > { %3995 = vmatmul.mubr.msk.bf16.vlgmr.msra.gmra.mrb[80].mxu0 %vm455_vm2, %v4348_v31  ;;  %4001 = vmatmul.mubr.msk.bf16.vlgmr.msra.gmra.mrb[80].mxu1 %vm455_vm2, %v4351_v32 }
  0xf9   : > { %4005 = vmatpush3.bf16.msra.mxu0 %v4575_v48  ;;  %4011 = vmatpush3.bf16.msra.mxu1 %v4578_v53 }
  0xfa   : > { %4006 = vmatprep.mubr.msk.bf16.mxu0 %vm4155_vm0, %v4154_v0  ;;  %4012 = vmatprep.mubr.msk.bf16.mxu1 %vm4155_vm0, %v4154_v0 }
  0xfb   : > { %v4824_v27 = vpop.f32.mrb[8].mxu0  ;;  %v4826_v28 = vpop.f32.mrb[8].mxu1  ;;  %4016 = vmatprep.subr.bf16.mxu0 %v4154_v0  ;;  %4022 = vmatprep.subr.bf16.mxu1 %v4154_v0 }
  0xfc   : > { %v3684_v31 = vpop.f32.mrb[9].mxu0  ;;  %v3690_v32 = vpop.f32.mrb[9].mxu1 }
  0xfd   : > { %v684_v33 = vpop.f32.mrb[10].mxu0  ;;  %v730_v34 = vpop.f32.mrb[10].mxu1 }
  0xfe   : > { %v3685_v39 = vpop.f32.mrb[11].mxu0  ;;  %v3691_v40 = vpop.f32.mrb[11].mxu1 }
 0x100   : > { %4007 = vmatmul.mubr.msk.bf16.vlgmr.msra.gmra.mrb[84].mxu0 %vm455_vm2, %v4374_v37  ;;  %4013 = vmatmul.mubr.msk.bf16.vlgmr.msra.gmra.mrb[84].mxu1 %vm455_vm2, %v4377_v38 }
 0x101   : > { %4017 = vmatpush3.bf16.msra.mxu0 %v4601_v5  ;;  %4023 = vmatpush3.bf16.msra.mxu1 %v4604_v18 }
 0x102   : > { %4018 = vmatprep.mubr.msk.bf16.mxu0 %vm4155_vm0, %v4154_v0  ;;  %4024 = vmatprep.mubr.msk.bf16.mxu1 %vm4155_vm0, %v4154_v0 }
 0x103   : > { %v4840_v45 = vpop.f32.mrb[12].mxu0  ;;  %v4842_v46 = vpop.f32.mrb[12].mxu1  ;;  %4028 = vmatprep.subr.bf16.mxu0 %v4154_v0  ;;  %4034 = vmatprep.subr.bf16.mxu1 %v4154_v0 }
 0x104   : > { %v3696_v37 = vpop.f32.mrb[13].mxu0  ;;  %v3702_v38 = vpop.f32.mrb[13].mxu1 }
 0x105   : > { %v776_v51 = vpop.f32.mrb[14].mxu0  ;;  %v822_v52 = vpop.f32.mrb[14].mxu1 }
 0x106   : > { %v3697_v55 = vpop.f32.mrb[15].mxu0  ;;  %v3703_v56 = vpop.f32.mrb[15].mxu1 }
 0x108   : > { %4019 = vmatmul.mubr.msk.bf16.vlgmr.msra.gmra.mrb[88].mxu0 %vm455_vm2, %v4400_v43  ;;  %4025 = vmatmul.mubr.msk.bf16.vlgmr.msra.gmra.mrb[88].mxu1 %vm455_vm2, %v4403_v44 }
 0x109   : > { %4029 = vmatpush3.bf16.msra.mxu0 %v4627_v59  ;;  %4035 = vmatpush3.bf16.msra.mxu1 %v4630_v50  ;;  %v4985_v50 = vld [vmem:[#allocation2_spill] sm:$0xff] }
 0x10a   : > { %4030 = vmatprep.mubr.msk.bf16.mxu0 %vm4155_vm0, %v4154_v0  ;;  %4036 = vmatprep.mubr.msk.bf16.mxu1 %vm4155_vm0, %v4154_v0 }
 0x10b   : > { %v4856_v57 = vpop.f32.mrb[16].mxu0  ;;  %v4858_v58 = vpop.f32.mrb[16].mxu1 }
 0x10c   : > { %v3708_v61 = vpop.f32.mrb[17].mxu0  ;;  %v3714_v62 = vpop.f32.mrb[17].mxu1 }
 0x10d   : > { %v868_v43 = vpop.f32.mrb[18].mxu0  ;;  %v914_v63 = vpop.f32.mrb[18].mxu1 }
 0x10e   : > { %v3709_v1 = vpop.f32.mrb[19].mxu0  ;;  %v3715_v44 = vpop.f32.mrb[19].mxu1 }
 0x110   : > { %4031 = vmatmul.mubr.msk.bf16.vlgmr.msra.gmra.mrb[92].mxu0 %vm455_vm2, %v4432_v49  ;;  %4037 = vmatmul.mubr.msk.bf16.vlgmr.msra.gmra.mrb[92].mxu1 %vm455_vm2, %v4985_v50 }
 0x113   : > { %v4864_v8 = vpop.f32.mrb[20].mxu0  ;;  %v4866_v11 = vpop.f32.mrb[20].mxu1 }
 0x114   : > { %v3720_v0 = vpop.f32.mrb[21].mxu0  ;;  %v3726_v12 = vpop.f32.mrb[21].mxu1 }
 0x115   : > { %v960_v17 = vpop.f32.mrb[22].mxu0  ;;  %v1006_v24 = vpop.f32.mrb[22].mxu1 }
 0x116   : > { %v3721_v29 = vpop.f32.mrb[23].mxu0  ;;  %v3727_v30 = vpop.f32.mrb[23].mxu1 }
 0x11b   : > { %v4868_v35 = vpop.f32.mrb[24].mxu0  ;;  %v4870_v42 = vpop.f32.mrb[24].mxu1 }
 0x11c   : > { %v3732_v47 = vpop.f32.mrb[25].mxu0  ;;  %v3738_v49 = vpop.f32.mrb[25].mxu1 }
 0x11d   : > { %v1052_v48 = vpop.f32.mrb[26].mxu0  ;;  %v1098_v53 = vpop.f32.mrb[26].mxu1 }
 0x11e   : > { %v3733_v60 = vpop.f32.mrb[27].mxu0  ;;  %v3739_v2 = vpop.f32.mrb[27].mxu1 }
 0x123   : > { %v4872_v5 = vpop.f32.mrb[28].mxu0  ;;  %v4874_v18 = vpop.f32.mrb[28].mxu1 }
 0x124   : > { %v3744_v41 = vpop.f32.mrb[29].mxu0  ;;  %v3750_v54 = vpop.f32.mrb[29].mxu1 }
 0x125   : > { %v1144_v59 = vpop.f32.mrb[30].mxu0  ;;  %v1190_v23 = vpop.f32.mrb[30].mxu1 }
 0x126   : > { %v3745_v36 = vpop.f32.mrb[31].mxu0  ;;  %v3751_v6 = vpop.f32.mrb[31].mxu1 }
 0x12b   : > { %v1233_v7 = vpop.f32.mrb[32].mxu0  ;;  %v1279_v9 = vpop.f32.mrb[32].mxu1 }
 0x12c   : > { %v1929_v10 = vsub.f32 %v4792_v3, %v1233_v7  ;;  %v1930_v13 = vsub.f32 %v4794_v4, %v1279_v9  ;;  %v3756_v14 = vpop.f32.mrb[33].mxu0  ;;  %v3762_v19 = vpop.f32.mrb[33].mxu1 }
 0x12d   : > { %v1236_v20 = vpop.f32.mrb[34].mxu0  ;;  %v1282_v21 = vpop.f32.mrb[34].mxu1 }
 0x12e   : > { %1946 = vst.msk [vmem:[%s4880_s13] sm:$0x3] %vm1945_vm3, %v1929_v10  ;;  %1947 = vst.msk [vmem:[%s4880_s13 + $0x2] sm:$0x3] %vm1945_vm3, %v1930_v13  ;;  %v3757_v22 = vpop.f32.mrb[35].mxu0  ;;  %v3763_v25 = vpop.f32.mrb[35].mxu1 }
 0x133   : > { %v1325_v26 = vpop.f32.mrb[36].mxu0  ;;  %v1371_v31 = vpop.f32.mrb[36].mxu1 }
 0x134   : > { %v1931_v32 = vsub.f32 %v4808_v15, %v1325_v26  ;;  %v1932_v3 = vsub.f32 %v4810_v16, %v1371_v31  ;;  %v3768_v33 = vpop.f32.mrb[37].mxu0  ;;  %v3774_v4 = vpop.f32.mrb[37].mxu1 }
 0x135   : > { %v1328_v34 = vpop.f32.mrb[38].mxu0  ;;  %v1374_v39 = vpop.f32.mrb[38].mxu1 }
 0x136   : > { %1948 = vst.msk [vmem:[%s4880_s13 + $0x4] sm:$0x3] %vm1945_vm3, %v1931_v32  ;;  %1949 = vst.msk [vmem:[%s4880_s13 + $0x6] sm:$0x3] %vm1945_vm3, %v1932_v3  ;;  %v3769_v40 = vpop.f32.mrb[39].mxu0  ;;  %v3775_v37 = vpop.f32.mrb[39].mxu1 }
 0x13b   : > { %v1417_v38 = vpop.f32.mrb[40].mxu0  ;;  %v1463_v51 = vpop.f32.mrb[40].mxu1 }
 0x13c   : > { %v1933_v52 = vsub.f32 %v4824_v27, %v1417_v38  ;;  %v1934_v15 = vsub.f32 %v4826_v28, %v1463_v51  ;;  %v3780_v55 = vpop.f32.mrb[41].mxu0  ;;  %v3786_v16 = vpop.f32.mrb[41].mxu1 }
 0x13d   : > { %v1420_v56 = vpop.f32.mrb[42].mxu0  ;;  %v1466_v61 = vpop.f32.mrb[42].mxu1 }
 0x13e   : > { %1950 = vst.msk [vmem:[%s4880_s13 + $0x8] sm:$0x3] %vm1945_vm3, %v1933_v52  ;;  %1951 = vst.msk [vmem:[%s4880_s13 + $0xa] sm:$0x3] %vm1945_vm3, %v1934_v15  ;;  %v3781_v62 = vpop.f32.mrb[43].mxu0  ;;  %v3787_v43 = vpop.f32.mrb[43].mxu1 }
 0x143   : > { %v1509_v63 = vpop.f32.mrb[44].mxu0  ;;  %v1555_v1 = vpop.f32.mrb[44].mxu1 }
 0x144   : > { %v1935_v44 = vsub.f32 %v4840_v45, %v1509_v63  ;;  %v1936_v27 = vsub.f32 %v4842_v46, %v1555_v1  ;;  %v3792_v50 = vpop.f32.mrb[45].mxu0  ;;  %v3798_v28 = vpop.f32.mrb[45].mxu1 }
 0x145   : > { %v1512_v0 = vpop.f32.mrb[46].mxu0  ;;  %v1558_v12 = vpop.f32.mrb[46].mxu1 }
 0x146   : > { %1952 = vst.msk [vmem:[%s4880_s13 + $0xc] sm:$0x3] %vm1945_vm3, %v1935_v44  ;;  %1953 = vst.msk [vmem:[%s4880_s13 + $0xe] sm:$0x3] %vm1945_vm3, %v1936_v27  ;;  %v3793_v17 = vpop.f32.mrb[47].mxu0  ;;  %v3799_v24 = vpop.f32.mrb[47].mxu1 }
 0x14b   : > { %v1601_v29 = vpop.f32.mrb[48].mxu0  ;;  %v1647_v30 = vpop.f32.mrb[48].mxu1 }
 0x14c   : > { %v1937_v47 = vsub.f32 %v4856_v57, %v1601_v29  ;;  %v1938_v45 = vsub.f32 %v4858_v58, %v1647_v30  ;;  %v3804_v49 = vpop.f32.mrb[49].mxu0  ;;  %v3810_v46 = vpop.f32.mrb[49].mxu1 }
 0x14d   : > { %v1604_v48 = vpop.f32.mrb[50].mxu0  ;;  %v1650_v53 = vpop.f32.mrb[50].mxu1 }
 0x14e   : > { %1954 = vst.msk [vmem:[%s4880_s13 + $0x10] sm:$0x3] %vm1945_vm3, %v1937_v47  ;;  %1955 = vst.msk [vmem:[%s4880_s13 + $0x12] sm:$0x3] %vm1945_vm3, %v1938_v45  ;;  %v3805_v60 = vpop.f32.mrb[51].mxu0  ;;  %v3811_v2 = vpop.f32.mrb[51].mxu1 }
 0x153   : > { %v1693_v41 = vpop.f32.mrb[52].mxu0  ;;  %v1739_v54 = vpop.f32.mrb[52].mxu1 }
 0x154   : > { %v1939_v59 = vsub.f32 %v4864_v8, %v1693_v41  ;;  %v1940_v57 = vsub.f32 %v4866_v11, %v1739_v54  ;;  %v3816_v23 = vpop.f32.mrb[53].mxu0  ;;  %v3822_v58 = vpop.f32.mrb[53].mxu1 }
 0x155   : > { %v1696_v36 = vpop.f32.mrb[54].mxu0  ;;  %v1742_v6 = vpop.f32.mrb[54].mxu1 }
 0x156   : > { %1956 = vst.msk [vmem:[%s4880_s13 + $0x14] sm:$0x3] %vm1945_vm3, %v1939_v59  ;;  %1957 = vst.msk [vmem:[%s4880_s13 + $0x16] sm:$0x3] %vm1945_vm3, %v1940_v57  ;;  %v3817_v7 = vpop.f32.mrb[55].mxu0  ;;  %v3823_v9 = vpop.f32.mrb[55].mxu1 }
 0x15b   : > { %v1785_v10 = vpop.f32.mrb[56].mxu0  ;;  %v1831_v13 = vpop.f32.mrb[56].mxu1 }
 0x15c   : > { %v1941_v14 = vsub.f32 %v4868_v35, %v1785_v10  ;;  %v1942_v8 = vsub.f32 %v4870_v42, %v1831_v13  ;;  %v3828_v19 = vpop.f32.mrb[57].mxu0  ;;  %v3834_v11 = vpop.f32.mrb[57].mxu1 }
 0x15d   : > { %v1788_v20 = vpop.f32.mrb[58].mxu0  ;;  %v1834_v21 = vpop.f32.mrb[58].mxu1 }
 0x15e   : > { %1958 = vst.msk [vmem:[%s4880_s13 + $0x18] sm:$0x3] %vm1945_vm3, %v1941_v14  ;;  %1959 = vst.msk [vmem:[%s4880_s13 + $0x1a] sm:$0x3] %vm1945_vm3, %v1942_v8  ;;  %v3829_v22 = vpop.f32.mrb[59].mxu0  ;;  %v3835_v25 = vpop.f32.mrb[59].mxu1 }
 0x163   : > { %v1877_v26 = vpop.f32.mrb[60].mxu0  ;;  %v1923_v31 = vpop.f32.mrb[60].mxu1 }
 0x164   : > { %v1943_v32 = vsub.f32 %v4872_v5, %v1877_v26  ;;  %v1944_v35 = vsub.f32 %v4874_v18, %v1923_v31  ;;  %v3840_v42 = vpop.f32.mrb[61].mxu0  ;;  %v3846_v3 = vpop.f32.mrb[61].mxu1 }
 0x165   : > { %v1880_v33 = vpop.f32.mrb[62].mxu0  ;;  %v1926_v4 = vpop.f32.mrb[62].mxu1 }
 0x166   : > { %1960 = vst.msk [vmem:[%s4880_s13 + $0x1c] sm:$0x3] %vm1945_vm3, %v1943_v32  ;;  %1961 = vst.msk [vmem:[%s4880_s13 + $0x1e] sm:$0x3] %vm1945_vm3, %v1944_v35  ;;  %v3841_v34 = vpop.f32.mrb[63].mxu0  ;;  %v3847_v39 = vpop.f32.mrb[63].mxu1 }
 0x1ab   : > { %v2636_v5 = vpop.f32.mrb[64].mxu0  ;;  %v2676_v18 = vpop.f32.mrb[64].mxu1 }
 0x1ac   : > { %3242 = vst.msk [vmem:[%s4934_s16] sm:$0x3] %vm1945_vm3, %v2636_v5  ;;  %3243 = vst.msk [vmem:[%s4934_s16 + $0x2] sm:$0x3] %vm1945_vm3, %v2676_v18  ;;  %v3948_v40 = vpop.f32.mrb[65].mxu0  ;;  %v3954_v37 = vpop.f32.mrb[65].mxu1 }
 0x1ad   : > { %v2639_v38 = vpop.f32.mrb[66].mxu0  ;;  %v2679_v51 = vpop.f32.mrb[66].mxu1 }
 0x1ae   : > { %v3949_v52 = vpop.f32.mrb[67].mxu0  ;;  %v3955_v15 = vpop.f32.mrb[67].mxu1 }
 0x1b3   : > { %v2716_v55 = vpop.f32.mrb[68].mxu0  ;;  %v2756_v16 = vpop.f32.mrb[68].mxu1 }
 0x1b4   : > { %3244 = vst.msk [vmem:[%s4934_s16 + $0x4] sm:$0x3] %vm1945_vm3, %v2716_v55  ;;  %3245 = vst.msk [vmem:[%s4934_s16 + $0x6] sm:$0x3] %vm1945_vm3, %v2756_v16  ;;  %v3960_v56 = vpop.f32.mrb[69].mxu0  ;;  %v3966_v61 = vpop.f32.mrb[69].mxu1 }
 0x1b5   : > { %v2719_v62 = vpop.f32.mrb[70].mxu0  ;;  %v2759_v43 = vpop.f32.mrb[70].mxu1 }
 0x1b6   : > { %v3961_v63 = vpop.f32.mrb[71].mxu0  ;;  %v3967_v1 = vpop.f32.mrb[71].mxu1 }
 0x1bb   : > { %v2796_v44 = vpop.f32.mrb[72].mxu0  ;;  %v2836_v27 = vpop.f32.mrb[72].mxu1 }
 0x1bc   : > { %3246 = vst.msk [vmem:[%s4934_s16 + $0x8] sm:$0x3] %vm1945_vm3, %v2796_v44  ;;  %3247 = vst.msk [vmem:[%s4934_s16 + $0xa] sm:$0x3] %vm1945_vm3, %v2836_v27  ;;  %v3972_v50 = vpop.f32.mrb[73].mxu0  ;;  %v3978_v28 = vpop.f32.mrb[73].mxu1 }
 0x1bd   : > { %v2799_v0 = vpop.f32.mrb[74].mxu0  ;;  %v2839_v12 = vpop.f32.mrb[74].mxu1 }
 0x1be   : > { %v3973_v17 = vpop.f32.mrb[75].mxu0  ;;  %v3979_v24 = vpop.f32.mrb[75].mxu1 }
 0x1c3   : > { %v2876_v29 = vpop.f32.mrb[76].mxu0  ;;  %v2916_v30 = vpop.f32.mrb[76].mxu1 }
 0x1c4   : > { %3248 = vst.msk [vmem:[%s4934_s16 + $0xc] sm:$0x3] %vm1945_vm3, %v2876_v29  ;;  %3249 = vst.msk [vmem:[%s4934_s16 + $0xe] sm:$0x3] %vm1945_vm3, %v2916_v30  ;;  %v3984_v47 = vpop.f32.mrb[77].mxu0  ;;  %v3990_v45 = vpop.f32.mrb[77].mxu1 }
 0x1c5   : > { %v2879_v49 = vpop.f32.mrb[78].mxu0  ;;  %v2919_v46 = vpop.f32.mrb[78].mxu1 }
 0x1c6   : > { %v3985_v48 = vpop.f32.mrb[79].mxu0  ;;  %v3991_v53 = vpop.f32.mrb[79].mxu1 }
 0x1cb   : > { %v2956_v60 = vpop.f32.mrb[80].mxu0  ;;  %v2996_v2 = vpop.f32.mrb[80].mxu1 }
 0x1cc   : > { %3250 = vst.msk [vmem:[%s4934_s16 + $0x10] sm:$0x3] %vm1945_vm3, %v2956_v60  ;;  %3251 = vst.msk [vmem:[%s4934_s16 + $0x12] sm:$0x3] %vm1945_vm3, %v2996_v2  ;;  %v3996_v41 = vpop.f32.mrb[81].mxu0  ;;  %v4002_v54 = vpop.f32.mrb[81].mxu1 }
 0x1cd   : > { %v2959_v59 = vpop.f32.mrb[82].mxu0  ;;  %v2999_v57 = vpop.f32.mrb[82].mxu1 }
 0x1ce   : > { %v3997_v23 = vpop.f32.mrb[83].mxu0  ;;  %v4003_v58 = vpop.f32.mrb[83].mxu1 }
 0x1d3   : > { %v3036_v36 = vpop.f32.mrb[84].mxu0  ;;  %v3076_v6 = vpop.f32.mrb[84].mxu1 }
 0x1d4   : > { %3252 = vst.msk [vmem:[%s4934_s16 + $0x14] sm:$0x3] %vm1945_vm3, %v3036_v36  ;;  %3253 = vst.msk [vmem:[%s4934_s16 + $0x16] sm:$0x3] %vm1945_vm3, %v3076_v6  ;;  %v4008_v7 = vpop.f32.mrb[85].mxu0  ;;  %v4014_v9 = vpop.f32.mrb[85].mxu1 }
 0x1d5   : > { %v3039_v10 = vpop.f32.mrb[86].mxu0  ;;  %v3079_v13 = vpop.f32.mrb[86].mxu1 }
 0x1d6   : > { %v4009_v14 = vpop.f32.mrb[87].mxu0  ;;  %v4015_v8 = vpop.f32.mrb[87].mxu1 }
 0x1db   : > { %v3116_v19 = vpop.f32.mrb[88].mxu0  ;;  %v3156_v11 = vpop.f32.mrb[88].mxu1 }
 0x1dc   : > { %3254 = vst.msk [vmem:[%s4934_s16 + $0x18] sm:$0x3] %vm1945_vm3, %v3116_v19  ;;  %3255 = vst.msk [vmem:[%s4934_s16 + $0x1a] sm:$0x3] %vm1945_vm3, %v3156_v11  ;;  %v4020_v20 = vpop.f32.mrb[89].mxu0  ;;  %v4026_v21 = vpop.f32.mrb[89].mxu1 }
 0x1dd   : > { %v3119_v22 = vpop.f32.mrb[90].mxu0  ;;  %v3159_v25 = vpop.f32.mrb[90].mxu1 }
 0x1de   : > { %v4021_v26 = vpop.f32.mrb[91].mxu0  ;;  %v4027_v31 = vpop.f32.mrb[91].mxu1 }
 0x1e3   : > { %v3196_v32 = vpop.f32.mrb[92].mxu0  ;;  %v3236_v35 = vpop.f32.mrb[92].mxu1 }
 0x1e4   : > { %3256 = vst.msk [vmem:[%s4934_s16 + $0x1c] sm:$0x3] %vm1945_vm3, %v3196_v32  ;;  %3257 = vst.msk [vmem:[%s4934_s16 + $0x1e] sm:$0x3] %vm1945_vm3, %v3236_v35  ;;  %v4032_v42 = vpop.f32.mrb[93].mxu0  ;;  %v4038_v3 = vpop.f32.mrb[93].mxu1 }
 0x1e5   : > { %v3199_v33 = vpop.f32.mrb[94].mxu0  ;;  %v3239_v4 = vpop.f32.mrb[94].mxu1 }
 0x1e6   : > { %v4033_v34 = vpop.f32.mrb[95].mxu0  ;;  %v4039_v39 = vpop.f32.mrb[95].mxu1 }
 0x1e7 PF: > { %s16_s20 = sadd.s32 1, %s4152_s20   ;;  %s4986_s18 = smov %s4148_s19 }
 0x1e8   : > { %p13_p5 = scmp.ge.s32.totalorder %s16_s20, 4   ;;  %s4987_s19 = smov %s4989_s21 }
 0x1ea   :  { %15 = sbr.rel (!%p13_p5) target bundleno = 2 (0x2), region = 87 }

</bundles_post_ra>
